<compile_context>
chip_gen: v7x
topology: tpu7x:2x2x1
jax: 0.10.0
libtpu: 0.0.40
codegen_flags: <defaults>
</compile_context>

<pallas_src>
import jax
import jax.numpy as jnp
from jax.experimental import pallas as pl
from jax.experimental.pallas import tpu as pltpu


def _round_up(x, m):
    return (x + m - 1) // m * m


def qnn1_kernel(scal_ref, t_ref, w1_ref, b1_ref, w2_ref, b2_ref, wo_ref,
                out_ref):
    bo = scal_ref[0]                 # effective output bias (scalar, SMEM)
    t = t_ref[...]                   # (1, TILE_N), lane-dense

    # Layer 1: both branches at once via the sublane-stacked weights.
    # MXU outer product + bias, VPU sin.
    h1 = jnp.sin(
        jnp.dot(w1_ref[...], t, preferred_element_type=jnp.float32)
        + b1_ref[...])                                   # (D_pad, TILE_N)

    # Layer 2: block-diagonal stacked weights -> one MXU matmul + one sin.
    h2 = jnp.sin(
        jnp.dot(w2_ref[...], h1, preferred_element_type=jnp.float32)
        + b2_ref[...])                                   # (D_pad, TILE_N)

    # Antisymmetric combination + output projection in a single MXU matvec
    # (the -t branch signs are baked into wo_ref).
    out_ref[...] = (
        jnp.dot(wo_ref[...], h2, preferred_element_type=jnp.float32) + bo)


def qnn1_forward(t, params, tile_n=8192):
    """t: (N, 1) float32. params: PyTorch-layout weights/biases.
    Returns (out, In1), both (N, 1) float32."""
    assert tile_n % 128 == 0
    N = t.shape[0]
    D_hid = params["w1"].shape[0]
    D2 = 2 * D_hid
    D_pad = _round_up(D2, 8)

    # ---- trace-time parameter prep (all folding is free; zero kernel cost) ----
    f32 = jnp.float32
    c = (params["we"][0, 0] + params["be"][0]).astype(f32)   # In1 constant
    W1, b1 = params["w1"].astype(f32), params["b1"].astype(f32)
    W2, b2 = params["w2"].astype(f32), params["b2"].astype(f32)
    Wo, bo = params["wo"].astype(f32), params["bo"].astype(f32)

    w1_t   = W1[:, 0]                       # (D_hid,) coefficient of t
    b1_eff = b1 + c * W1[:, 1]              # (D_hid,)
    W2h    = W2[:, :D_hid]                  # (D_hid, D_hid)
    b2_eff = b2 + c * W2[:, D_hid]          # (D_hid,)
    wo_h   = Wo[0, :D_hid]                  # (D_hid,)
    bo_eff = bo[0] + c * Wo[0, D_hid]       # scalar

    # Sublane-stacked / block-diagonal parameters (+t branch rows 0..D-1,
    # -t branch rows D..2D-1, zero padding up to D_pad).
    w1_s = (jnp.zeros((D_pad, 1), f32)
            .at[:D_hid, 0].set(w1_t)
            .at[D_hid:D2, 0].set(-w1_t))
    b1_s = (jnp.zeros((D_pad, 1), f32)
            .at[:D_hid, 0].set(b1_eff)
            .at[D_hid:D2, 0].set(b1_eff))
    W2_s = (jnp.zeros((D_pad, D_pad), f32)
            .at[:D_hid, :D_hid].set(W2h)
            .at[D_hid:D2, D_hid:D2].set(W2h))
    b2_s = (jnp.zeros((D_pad, 1), f32)
            .at[:D_hid, 0].set(b2_eff)
            .at[D_hid:D2, 0].set(b2_eff))
    wo_s = (jnp.zeros((1, D_pad), f32)
            .at[0, :D_hid].set(wo_h)
            .at[0, D_hid:D2].set(-wo_h))
    scal = jnp.reshape(bo_eff, (1,)).astype(f32)         # -> SMEM

    # ---- lane-dense input layout + padding to a multiple of the tile ----
    n128 = _round_up(max(N, 1), 128)
    if n128 <= tile_n:
        # Split into >= 2 grid steps when possible so the "parallel" axis can
        # shard across both TensorCores on v7x (no effect on v5e/v6e).
        tile_n = max(128, _round_up(n128 // 2, 128))
        n_pad = _round_up(n128, tile_n)
    else:
        n_pad = _round_up(N, tile_n)
    t_row = jnp.pad(t.reshape(1, N).astype(f32), ((0, 0), (0, n_pad - N)))

    grid = (n_pad // tile_n,)

    def wspec(shape):
        return pl.BlockSpec(shape, lambda i: (0, 0))

    out_row = pl.pallas_call(
        qnn1_kernel,
        out_shape=jax.ShapeDtypeStruct((1, n_pad), jnp.float32),
        grid=grid,
        in_specs=[
            pl.BlockSpec((1,), lambda i: (0,),
                         memory_space=pltpu.MemorySpace.SMEM),   # bo_eff
            pl.BlockSpec((1, tile_n), lambda i: (0, i)),         # t
            wspec((D_pad, 1)),                                   # w1_s
            wspec((D_pad, 1)),                                   # b1_s
            wspec((D_pad, D_pad)),                               # W2_s
            wspec((D_pad, 1)),                                   # b2_s
            wspec((1, D_pad)),                                   # wo_s
        ],
        out_specs=pl.BlockSpec((1, tile_n), lambda i: (0, i)),
        compiler_params=pltpu.CompilerParams(
            dimension_semantics=("parallel",)),
    )(scal, t_row, w1_s, b1_s, W2_s, b2_s, wo_s)

    out = out_row[0, :N].reshape(N, 1)
    In1 = jnp.full((N, 1), c, dtype=jnp.float32)          # trace-time constant
    return out, In1


def init_params(key, D_hid=10):
    """Deterministic init mimicking torch.nn.Linear (uniform +-1/sqrt(fan_in)),
    stored in PyTorch layout (weight: (out_features, in_features))."""
    ks = jax.random.split(key, 8)

    def u(k, shape, fan_in):
        bound = 1.0 / jnp.sqrt(float(fan_in))
        return jax.random.uniform(k, shape, jnp.float32, -bound, bound)

    return {
        "we": u(ks[0], (1, 1), 1),                        # Ein.weight
        "be": u(ks[1], (1,), 1),                          # Ein.bias
        "w1": u(ks[2], (D_hid, 2), 2),                    # Lin_1.weight
        "b1": u(ks[3], (D_hid,), 2),                      # Lin_1.bias
        "w2": u(ks[4], (D_hid, D_hid + 1), D_hid + 1),    # Lin_2.weight
        "b2": u(ks[5], (D_hid,), D_hid + 1),              # Lin_2.bias
        "wo": u(ks[6], (1, D_hid + 1), D_hid + 1),        # out.weight
        "bo": u(ks[7], (1,), D_hid + 1),                  # out.bias
    }


def qnn1_reference(t, params):
    """Pure-JAX reference matching the PyTorch forward exactly (sym=False)."""
    In1 = jnp.ones_like(t) @ params["we"].T + params["be"]
    L1 = jnp.concatenate([t, In1], 1) @ params["w1"].T + params["b1"]
    L1p = jnp.concatenate([-t, In1], 1) @ params["w1"].T + params["b1"]
    h1, h1p = jnp.sin(L1), jnp.sin(L1p)
    L2 = jnp.concatenate([h1, In1], 1) @ params["w2"].T + params["b2"]
    L2p = jnp.concatenate([h1p, In1], 1) @ params["w2"].T + params["b2"]
    h2, h2p = jnp.sin(L2), jnp.sin(L2p)
    out = jnp.concatenate([h2 - h2p, In1], 1) @ params["wo"].T + params["bo"]
    return out, In1


if __name__ == "__main__":
    key = jax.random.PRNGKey(0)
    k_param, k_t1, k_t2, k_t3 = jax.random.split(key, 4)

    D_hid = 10
    params = init_params(k_param, D_hid=D_hid)

    # Primary small test (matches the module's (N, 1) input).
    t = jax.random.uniform(k_t1, (8, 1), jnp.float32, 0.0, 2.0)
    out, In1 = qnn1_forward(t, params)
    jax.block_until_ready((out, In1))
    out_r, In1_r = qnn1_reference(t, params)
    assert jnp.allclose(out, out_r, atol=1e-5, rtol=1e-5)
    assert jnp.allclose(In1, In1_r, atol=1e-6, rtol=1e-6)

    # Second test exercising the padded tail and a multi-step grid.
    t2 = jax.random.uniform(k_t2, (300, 1), jnp.float32, 0.0, 2.0)
    out2, In12 = qnn1_forward(t2, params, tile_n=128)
    jax.block_until_ready((out2, In12))
    out2_r, In12_r = qnn1_reference(t2, params)
    assert jnp.allclose(out2, out2_r, atol=1e-5, rtol=1e-5)
    assert jnp.allclose(In12, In12_r, atol=1e-6, rtol=1e-6)

    # Third test covering the auto-split (>= 2 parallel steps) path.
    t3 = jax.random.uniform(k_t3, (1000, 1), jnp.float32, 0.0, 2.0)
    out3, In13 = qnn1_forward(t3, params)
    jax.block_until_ready((out3, In13))
    out3_r, In13_r = qnn1_reference(t3, params)
    assert jnp.allclose(out3, out3_r, atol=1e-5, rtol=1e-5)
    assert jnp.allclose(In13, In13_r, atol=1e-6, rtol=1e-6)

    print("KERNEL_OK")
</pallas_src>

<mosaic_0001>
module attributes {stable_mosaic.version = 11 : i64} {
  func.func @qnn1_kernel(%arg0: i32, %arg1: memref<1xf32, #tpu.memory_space<smem>>, %arg2: memref<1x128xf32, #tpu.memory_space<vmem>>, %arg3: memref<24x1xf32, #tpu.memory_space<vmem>>, %arg4: memref<24x1xf32, #tpu.memory_space<vmem>>, %arg5: memref<24x24xf32, #tpu.memory_space<vmem>>, %arg6: memref<24x1xf32, #tpu.memory_space<vmem>>, %arg7: memref<1x24xf32, #tpu.memory_space<vmem>>, %arg8: memref<1x128xf32, #tpu.memory_space<vmem>>) attributes {dimension_semantics = [#tpu.dimension_semantics<parallel>], iteration_bounds = array<i64: 1>, scalar_prefetch = 0 : i64, scratch_operands = 0 : i64, tpu.core_type = #tpu.core_type<tc>, window_params = [{transform_indices = @transform_0, window_bounds = array<i64: 1>}, {transform_indices = @transform_1, window_bounds = array<i64: 1, 128>}, {pipeline_mode = #tpu.pipeline_mode<synchronous>, transform_indices = @transform_2, window_bounds = array<i64: 24, 1>}, {pipeline_mode = #tpu.pipeline_mode<synchronous>, transform_indices = @transform_3, window_bounds = array<i64: 24, 1>}, {pipeline_mode = #tpu.pipeline_mode<synchronous>, transform_indices = @transform_4, window_bounds = array<i64: 24, 24>}, {pipeline_mode = #tpu.pipeline_mode<synchronous>, transform_indices = @transform_5, window_bounds = array<i64: 24, 1>}, {pipeline_mode = #tpu.pipeline_mode<synchronous>, transform_indices = @transform_6, window_bounds = array<i64: 1, 24>}, {transform_indices = @transform_7, window_bounds = array<i64: 1, 128>}]} {
    %c0 = arith.constant 0 : index
    %0 = memref.load %arg1[%c0] : memref<1xf32, #tpu.memory_space<smem>>
    %c0_0 = arith.constant 0 : index
    %c0_1 = arith.constant 0 : index
    %1 = vector.load %arg2[%c0_0, %c0_1] : memref<1x128xf32, #tpu.memory_space<vmem>>, vector<1x128xf32>
    %c0_2 = arith.constant 0 : index
    %c0_3 = arith.constant 0 : index
    %2 = vector.load %arg3[%c0_2, %c0_3] : memref<24x1xf32, #tpu.memory_space<vmem>>, vector<24x1xf32>
    %cst = arith.constant dense<0.000000e+00> : vector<24x128xf32>
    %3 = tpu.matmul %2, %1, %cst {dimension_numbers = #tpu.dot_dimension_numbers<[1], [0], [0], [1], [0, 0, 1, 1], [], []>} : vector<24x1xf32>, vector<1x128xf32>, vector<24x128xf32> -> vector<24x128xf32>
    %c0_4 = arith.constant 0 : index
    %c0_5 = arith.constant 0 : index
    %4 = vector.load %arg4[%c0_4, %c0_5] : memref<24x1xf32, #tpu.memory_space<vmem>>, vector<24x1xf32>
    %5 = vector.broadcast %4 : vector<24x1xf32> to vector<24x128xf32>
    %6 = arith.addf %3, %5 : vector<24x128xf32>
    %7 = math.sin %6 : vector<24x128xf32>
    %c0_6 = arith.constant 0 : index
    %c0_7 = arith.constant 0 : index
    %8 = vector.load %arg5[%c0_6, %c0_7] : memref<24x24xf32, #tpu.memory_space<vmem>>, vector<24x24xf32>
    %cst_8 = arith.constant dense<0.000000e+00> : vector<24x128xf32>
    %9 = tpu.matmul %8, %7, %cst_8 {dimension_numbers = #tpu.dot_dimension_numbers<[1], [0], [0], [1], [0, 0, 1, 1], [], []>} : vector<24x24xf32>, vector<24x128xf32>, vector<24x128xf32> -> vector<24x128xf32>
    %c0_9 = arith.constant 0 : index
    %c0_10 = arith.constant 0 : index
    %10 = vector.load %arg6[%c0_9, %c0_10] : memref<24x1xf32, #tpu.memory_space<vmem>>, vector<24x1xf32>
    %11 = vector.broadcast %10 : vector<24x1xf32> to vector<24x128xf32>
    %12 = arith.addf %9, %11 : vector<24x128xf32>
    %13 = math.sin %12 : vector<24x128xf32>
    %c0_11 = arith.constant 0 : index
    %c0_12 = arith.constant 0 : index
    %14 = vector.load %arg7[%c0_11, %c0_12] : memref<1x24xf32, #tpu.memory_space<vmem>>, vector<1x24xf32>
    %cst_13 = arith.constant dense<0.000000e+00> : vector<1x128xf32>
    %15 = tpu.matmul %14, %13, %cst_13 {dimension_numbers = #tpu.dot_dimension_numbers<[1], [0], [0], [1], [0, 0, 1, 1], [], []>} : vector<1x24xf32>, vector<24x128xf32>, vector<1x128xf32> -> vector<1x128xf32>
    %16 = vector.broadcast %0 : f32 to vector<1x128xf32>
    %17 = arith.addf %15, %16 : vector<1x128xf32>
    %c0_14 = arith.constant 0 : index
    %c0_15 = arith.constant 0 : index
    %18 = vector.load %arg8[%c0_14, %c0_15] : memref<1x128xf32, #tpu.memory_space<vmem>>, vector<1x128xf32>
    tpu.vector_store %arg8[%c0_14, %c0_15], %17 {strides = array<i32>} : memref<1x128xf32, #tpu.memory_space<vmem>>, vector<1x128xf32>,
    return
  }
  func.func @transform_0(%arg0: i32) -> i32 {
    %c0_i32 = arith.constant 0 : i32
    %c0_i32_0 = arith.constant 0 : i32
    return %c0_i32 : i32
  }
  func.func @transform_1(%arg0: i32) -> (i32, i32) {
    %c0_i32 = arith.constant 0 : i32
    %c0_i32_0 = arith.constant 0 : i32
    return %c0_i32, %arg0 : i32, i32
  }
  func.func @transform_2(%arg0: i32) -> (i32, i32) {
    %c0_i32 = arith.constant 0 : i32
    %c0_i32_0 = arith.constant 0 : i32
    %c0_i32_1 = arith.constant 0 : i32
    return %c0_i32, %c0_i32_0 : i32, i32
  }
  func.func @transform_3(%arg0: i32) -> (i32, i32) {
    %c0_i32 = arith.constant 0 : i32
    %c0_i32_0 = arith.constant 0 : i32
    %c0_i32_1 = arith.constant 0 : i32
    return %c0_i32, %c0_i32_0 : i32, i32
  }
  func.func @transform_4(%arg0: i32) -> (i32, i32) {
    %c0_i32 = arith.constant 0 : i32
    %c0_i32_0 = arith.constant 0 : i32
    %c0_i32_1 = arith.constant 0 : i32
    return %c0_i32, %c0_i32_0 : i32, i32
  }
  func.func @transform_5(%arg0: i32) -> (i32, i32) {
    %c0_i32 = arith.constant 0 : i32
    %c0_i32_0 = arith.constant 0 : i32
    %c0_i32_1 = arith.constant 0 : i32
    return %c0_i32, %c0_i32_0 : i32, i32
  }
  func.func @transform_6(%arg0: i32) -> (i32, i32) {
    %c0_i32 = arith.constant 0 : i32
    %c0_i32_0 = arith.constant 0 : i32
    %c0_i32_1 = arith.constant 0 : i32
    return %c0_i32, %c0_i32_0 : i32, i32
  }
  func.func @transform_7(%arg0: i32) -> (i32, i32) {
    %c0_i32 = arith.constant 0 : i32
    %c0_i32_0 = arith.constant 0 : i32
    return %c0_i32, %arg0 : i32, i32
  }
}

</mosaic_0001>

<bundles_post_ra>
// kernel: tpu_custom_call.1
= control target key start
LH: loop header
LB: loop body
LE: loop exit
PB: predicated region body
PF: predicated region fallthrough
CT: control target
= control target key end

     0   :  { %vm61_vm0 = vcmask 1040384   ;;  %v1142_v2 = vmov 0.0   ;;  %vm1143_vm1 = vmmov 0   ;;  %vm51_vm2 = vcmask 7168   ;;  %s1598_s0 = inlined_call_operand.<no memory space> [shape: f32[1], index: 0, kind: input, shape index: {}]   ;;  %s1599_s1 = inlined_call_operand.vmem [shape: f32[1,128], index: 1, kind: input, shape index: {}]   ;;  %s1600_s2 = inlined_call_operand.vmem [shape: f32[24,1], index: 2, kind: input, shape index: {}]   ;;  %s1601_s3 = inlined_call_operand.vmem [shape: f32[24,1], index: 3, kind: input, shape index: {}]   ;;  %s1602_s4 = inlined_call_operand.vmem [shape: f32[24,24], index: 4, kind: input, shape index: {}]   ;;  %s1603_s5 = inlined_call_operand.vmem [shape: f32[24,1], index: 5, kind: input, shape index: {}]   ;;  %s1604_s6 = inlined_call_operand.vmem [shape: f32[1,24], index: 6, kind: input, shape index: {}]   ;;  %s1605_s7 = inlined_call_operand.hbm [shape: f32[1,128], index: 7, kind: output, shape index: {}]  }
   0x1   :  { %v29_v0 = vld [vmem:[%s1599_s1] sm:$0x1]  ;;  %1016 = vmatprep.subr.mxu0 %v1142_v2  ;;  %1018 = vmatprep.mubr.msk.f32.mxu0 %vm1143_vm1, %v1142_v2  ;;  %v1144_v4 = vmov 0   ;;  %v35_v5 = vld [vmem:[%s1601_s3 + $0x10] sm:$0xff] }
   0x2   :  { %v30_v1 = vld [vmem:[%s1600_s2] sm:$0xff]  ;;  %1017 = vmatpush3.msk.msra.mxu0 %vm61_vm0, %v29_v0  ;;  %1092 = vset.pattern.permute.xlu0 %v1144_v4 }
   0x3   :  { %v33_v3 = vld [vmem:[%s1601_s3] sm:$0xff]  ;;  %1019 = vmatmul.mubr.msk.f32.vlgmr.msra.gmra.mrb[0].mxu0 %vm51_vm2, %v30_v1 }
   0x4   :  { %38 = vperm.xlu0 %1092, %v33_v3  }
   0x5   :  { %13 = vsyncpa [#allocation4], 0  ;;  %1021 = vmatprep.mubr.msk.f32.mxu0 %vm1143_vm1, %v1142_v2  ;;  %v31_v6 = vld [vmem:[%s1600_s2 + $0x8] sm:$0xff]  ;;  %1093 = vset.pattern.permute.xlu1 %v1144_v4  ;;  %v460_v8 = vld [vmem:[%s1603_s5] sm:$0xff]  ;;  %v1145_v12 = vmov 0.0|0.0   ;;  %s1152_s26 = smov [#allocation3]  }
   0x6   :  { %v34_v7 = vld [vmem:[%s1601_s3 + $0x8] sm:$0xff]  ;;  %48 = vperm.xlu1 %1093, %v35_v5   ;;  %1033 = vmatprep.mubr.msk.f32.mxu1 %vm1143_vm1, %v1142_v2  ;;  %v32_v9 = vld [vmem:[%s1600_s2 + $0x10] sm:$0xff]  ;;  %v1146_v45 = vmov 683565275   ;;  %v1147_v47 = vmov 2475754826  }
   0x7   :  { %1022 = vmatmul.mubr.msk.f32.gmra.mrb[2].mxu0 %vm51_vm2, %v31_v6  ;;  %v461_v10 = vld [vmem:[%s1603_s5 + $0x8] sm:$0xff]  ;;  %v462_v11 = vld [vmem:[%s1603_s5 + $0x10] sm:$0xff]  ;;  %1051 = vmatprep.subr.bf16.mxu1 %v1145_v12  ;;  %v1148_v50 = vmov 2131351028   ;;  %v1149_v52 = vmov 2102212464  }
   0x8   :  { %43 = vperm.xlu0 %1092, %v34_v7   ;;  %1024 = vmatprep.mubr.msk.f32.mxu0 %vm1143_vm1, %v1142_v2  ;;  %v1150_v54 = vmov 920167782   ;;  %v1151_v61 = vmov 1326507024   ;;  %s962_s27 = sshll.u32 %s1152_s26, 4  ;;  %s963_s27 = int_to_ptr.vmem [resolvable:$true] %s962_s27 }
   0x9   :  { %1054 = vmatprep.subr.bf16.mxu0 %v1145_v12  ;;  %s1118_s28 = scalar_lea.vmem %s963_s27, 16  ;;  %s1122_s29 = scalar_lea.vmem %s963_s27, 32 }
   0xa   :  { %465 = vperm.xlu1 %1093, %v460_v8   ;;  %p1119_p0 = scmp.ne.s32.totalorder %s963_s27, %s1118_s28  ;;  %p1123_p1 = scmp.lt.s32.totalorder %s963_s27, %s963_s27 }
   0xb   :  { %1025 = vmatmul.mubr.msk.f32.gmra.mrb[4].mxu0 %vm51_vm2, %v32_v9  ;;  %p1124_p2 = scmp.lt.s32.totalorder %s1122_s29, %s1118_s28 }
   0xc   :  { %470 = vperm.xlu0 %1092, %v461_v10   ;;  %1048 = vmatprep.mubr.msk.f32.mxu0 %vm1143_vm1, %v1142_v2 }
   0xd   :  { %p1125_p3 = por %p1124_p2, %p1123_p1 }
   0xe   :  { %475 = vperm.xlu1 %1093, %v462_v11  }
   0xf   :  { %p1126_p4 = pnand %p1125_p3, %p1119_p0 }
  0x83   :  { %v39_v13 = vpop.permute.xlu0 %38 }
  0x85   :  { %v49_v27 = vpop.permute.xlu1 %48 }
  0x87   :  { %v44_v19 = vpop.permute.xlu0 %43 }
  0xd6   :  { %v131_v14 = vpop.f32.mrb[0].mxu0 }
  0xd7   :  { %v1237_v15 = vadd.f32 %v131_v14, %v39_v13  ;;  %v1020_v16 = vpop.f32.mrb[1].mxu0 }
  0xd9   :  { %v145_v17 = vand.u32 2147483647, %v1237_v15  ;;  %v148_v18 = vand.u32 2139095040, %v1237_v15 }
  0xda   :  { %v136_v20 = vpop.f32.mrb[2].mxu0 }
  0xdb   :  { %v149_v21 = vshrl.u32 %v148_v18, 23  ;;  %v1241_v22 = vadd.f32 %v136_v20, %v44_v19  ;;  %v1023_v23 = vpop.f32.mrb[3].mxu0  ;;  %v152_v24 = vand.u32 8388607, %v145_v17 }
  0xdd   :  { %v974_v25 = vadd.s32 4294967169, %v149_v21  ;;  %v249_v26 = vand.u32 2147483647, %v1241_v22  ;;  %v252_v28 = vand.u32 2139095040, %v1241_v22  ;;  %v153_v33 = vor.u32 8388608, %v152_v24 }
  0xde   :  { %v141_v29 = vpop.f32.mrb[4].mxu0 }
  0xdf   :  { %v155_v30 = vadd.s32 1, %v974_v25  ;;  %v1247_v31 = vadd.f32 %v141_v29, %v49_v27  ;;  %v1026_v32 = vpop.f32.mrb[5].mxu0  ;;  %v253_v34 = vshrl.u32 %v252_v28, 23  ;;  %v256_v35 = vand.u32 8388607, %v249_v26 }
  0xe0   :  { %v1252_v41 = vshll.u32 %v153_v33, 8 }
  0xe1   :  { %vm156_vm3 = vcmp.gt.s32.totalorder %v155_v30, 0  ;;  %v978_v37 = vadd.s32 4294967169, %v253_v34  ;;  %v356_v38 = vand.u32 2139095040, %v1247_v31  ;;  %v257_v42 = vor.u32 8388608, %v256_v35 }
  0xe2   :  { %v157_v36 = vsel %vm156_vm3, %v155_v30, 0  ;;  %v353_v24 = vand.u32 2147483647, %v1247_v31 }
  0xe3   :  { %v158_v39 = vshrl.u32 %v157_v36, 5  ;;  %v159_v40 = vand.u32 31, %v157_v36  ;;  %v259_v43 = vadd.s32 1, %v978_v37  ;;  %v357_v49 = vshrl.u32 %v356_v38, 23 }
  0xe4   :  { %v1274_v23 = vshll.u32 %v257_v42, 8 }
  0xe5   :  { %v160_v44 = vsub.s32 32, %v159_v40  ;;  %v162_v46 = vshll.u32 %v1146_v45, %v159_v40  ;;  %v165_v48 = vshll.u32 %v1147_v47, %v159_v40  ;;  %v168_v51 = vshll.u32 %v1148_v50, %v159_v40 }
  0xe6   :  { %v171_v53 = vshll.u32 %v1149_v52, %v159_v40  ;;  %v174_v55 = vshll.u32 %v1150_v54, %v159_v40  ;;  %vm177_vm4 = vcmp.lt.s32.totalorder %v158_v39, 1  ;;  %vm178_vm5 = vcmp.lt.s32.totalorder %v158_v39, 2 }
  0xe7   :  { %v163_v56 = vshrl.u32 %v1147_v47, %v160_v44  ;;  %v166_v57 = vshrl.u32 %v1148_v50, %v160_v44  ;;  %v169_v58 = vshrl.u32 %v1149_v52, %v160_v44  ;;  %v161_v59 = vshrl.u32 %v1146_v45, %v160_v44 }
  0xe8   :  { %v172_v60 = vshrl.u32 %v1150_v54, %v160_v44  ;;  %v175_v62 = vshrl.u32 %v1151_v61, %v160_v44  ;;  %vm179_vm6 = vcmp.lt.s32.totalorder %v158_v39, 3  ;;  %vm260_vm7 = vcmp.gt.s32.totalorder %v259_v43, 0 }
  0xe9   :  { %v164_v63 = vor.u32 %v163_v56, %v162_v46  ;;  %v167_v0 = vor.u32 %v166_v57, %v165_v48  ;;  %v170_v1 = vor.u32 %v169_v58, %v168_v51  ;;  %vm180_vm8 = vcmp.lt.s32.totalorder %v158_v39, 4 }
  0xea   :  { %v173_v3 = vor.u32 %v172_v60, %v171_v53  ;;  %v176_v4 = vor.u32 %v175_v62, %v174_v55  ;;  %v261_v5 = vsel %vm260_vm7, %v259_v43, 0  ;;  %v982_v33 = vadd.s32 4294967169, %v357_v49 }
  0xeb   :  { %v181_v6 = vsel %vm177_vm4, %v161_v59, %v164_v63  ;;  %v182_v7 = vsel %vm180_vm8, %v170_v1, 2102212464  ;;  %v185_v8 = vsel %vm177_vm4, %v164_v63, %v167_v0  ;;  %v189_v9 = vsel %vm177_vm4, %v167_v0, %v170_v1 }
  0xec   :  { %v183_v10 = vsel %vm179_vm6, %v167_v0, %v182_v7  ;;  %v186_v11 = vsel %vm180_vm8, %v173_v3, 920167782  ;;  %v190_v12 = vsel %vm180_vm8, %v176_v4, 1326507024  ;;  %v262_v13 = vshrl.u32 %v261_v5, 5 }
  0xed   :  { %v184_v14 = vsel %vm178_vm5, %v181_v6, %v183_v10  ;;  %v187_v16 = vsel %vm179_vm6, %v170_v1, %v186_v11  ;;  %v191_v18 = vsel %vm179_vm6, %v173_v3, %v190_v12  ;;  %v263_v19 = vand.u32 31, %v261_v5 }
  0xee   :  { %v188_v20 = vsel %vm178_vm5, %v185_v8, %v187_v16  ;;  %v192_v21 = vsel %vm178_vm5, %v189_v9, %v191_v18  ;;  %v200_v30 = vmul.u32 %v1252_v41, %v184_v14  ;;  %vm281_vm9 = vcmp.lt.s32.totalorder %v262_v13, 1 }
  0xef   :  { %v1278_v25 = vmul.u32.u64.low %v1252_v41, %v192_v21  ;;  %v1279_v27 = vmul.u32.u64.high %v1252_v41, %v192_v21, %v1278_v25  ;;  %v1282_v28 = vmul.u32.u64.low %v1252_v41, %v188_v20  ;;  %v1283_v29 = vmul.u32.u64.high %v1252_v41, %v188_v20, %v1282_v28 }
  0xf0   :  { %v264_v32 = vsub.s32 32, %v263_v19  ;;  %v266_v34 = vshll.u32 %v1146_v45, %v263_v19  ;;  %v269_v35 = vshll.u32 %v1147_v47, %v263_v19  ;;  %v272_v36 = vshll.u32 %v1148_v50, %v263_v19 }
  0xf1   :  { %v275_v37 = vshll.u32 %v1149_v52, %v263_v19  ;;  %v278_v42 = vshll.u32 %v1150_v54, %v263_v19  ;;  %vm202_vm10 = vc.u32 %v1279_v27, %v1282_v28  ;;  %v203_v41 = vadd.s32 1, %v1283_v29 }
  0xf2   :  { %v267_v38 = vshrl.u32 %v1147_v47, %v264_v32  ;;  %v270_v39 = vshrl.u32 %v1148_v50, %v264_v32  ;;  %v273_v40 = vshrl.u32 %v1149_v52, %v264_v32  ;;  %v276_v43 = vshrl.u32 %v1150_v54, %v264_v32 }
  0xf3   :  { %vm282_vm11 = vcmp.lt.s32.totalorder %v262_v13, 2  ;;  %v279_v49 = vshrl.u32 %v1151_v61, %v264_v32  ;;  %v204_v51 = vsel %vm202_vm10, %v203_v41, %v1283_v29  ;;  %v265_v53 = vshrl.u32 %v1146_v45, %v264_v32 }
  0xf4   :  { %v268_v44 = vor.u32 %v267_v38, %v266_v34  ;;  %v271_v46 = vor.u32 %v270_v39, %v269_v35  ;;  %v274_v48 = vor.u32 %v273_v40, %v272_v36  ;;  %v277_v55 = vor.u32 %v276_v43, %v275_v37 }
  0xf5   :  { %vm284_vm12 = vcmp.lt.s32.totalorder %v262_v13, 4  ;;  %v205_v56 = vadd.s32 %v204_v51, %v200_v30  ;;  %v280_v57 = vor.u32 %v279_v49, %v278_v42  ;;  %vm283_vm13 = vcmp.lt.s32.totalorder %v262_v13, 3 }
  0xf6   :  { %v286_v58 = vsel %vm284_vm12, %v274_v48, 2102212464  ;;  %v285_v59 = vsel %vm281_vm9, %v265_v53, %v268_v44  ;;  %v289_v60 = vsel %vm281_vm9, %v268_v44, %v271_v46  ;;  %v290_v62 = vsel %vm284_vm12, %v277_v55, 920167782 }
  0xf7   :  { %v293_v63 = vsel %vm281_vm9, %v271_v46, %v274_v48  ;;  %v206_v0 = vadd.s32 536870912, %v205_v56  ;;  %v287_v1 = vsel %vm283_vm13, %v271_v46, %v286_v58  ;;  %v291_v3 = vsel %vm283_vm13, %v274_v48, %v290_v62 }
  0xf8   :  { %v294_v4 = vsel %vm284_vm12, %v280_v57, 1326507024  ;;  %v292_v5 = vsel %vm282_vm11, %v289_v60, %v291_v3  ;;  %v360_v7 = vand.u32 8388607, %v353_v24  ;;  %v363_v8 = vadd.s32 1, %v982_v33 }
  0xf9   :  { %v295_v6 = vsel %vm283_vm13, %v277_v55, %v294_v4  ;;  %v1308_v9 = vshrl.u32 %v206_v0, 30  ;;  %v1312_v11 = vmul.u32.u64.low %v1274_v23, %v292_v5  ;;  %v1313_v12 = vmul.u32.u64.high %v1274_v23, %v292_v5, %v1312_v11 }
  0xfa   :  { %v296_v10 = vsel %vm282_vm11, %v293_v63, %v295_v6  ;;  %v288_v14 = vsel %vm282_vm11, %v285_v59, %v287_v1  ;;  %vm364_vm14 = vcmp.gt.s32.totalorder %v363_v8, 0  ;;  %v361_v32 = vor.u32 8388608, %v360_v7 }
  0xfb   :  { %v1318_v16 = vmul.u32.u64.low %v1274_v23, %v296_v10  ;;  %v1319_v18 = vmul.u32.u64.high %v1274_v23, %v296_v10, %v1318_v16  ;;  %v208_v19 = vshll.u32 %v1308_v9, 30  ;;  %v365_v20 = vsel %vm364_vm14, %v363_v8, 0 }
  0xfc   :  { %v367_v21 = vand.u32 31, %v365_v20  ;;  %v304_v29 = vmul.u32 %v1274_v23, %v288_v14  ;;  %v307_v30 = vadd.s32 1, %v1313_v12  ;;  %v366_v13 = vshrl.u32 %v365_v20, 5 }
  0xfd   :  { %v1322_v25 = vsub.s32 %v205_v56, %v208_v19  ;;  %vm306_vm15 = vc.u32 %v1319_v18, %v1312_v11  ;;  %v201_v59 = vadd.s32 %v1282_v28, %v1279_v27  ;;  %v401_v62 = vshll.u32 %v361_v32, 8 }
  0xfe   :  { %v368_v33 = vsub.s32 32, %v367_v21  ;;  %v370_v34 = vshll.u32 %v1146_v45, %v367_v21  ;;  %v308_v36 = vsel %vm306_vm15, %v307_v30, %v1313_v12  ;;  %v373_v37 = vshll.u32 %v1147_v47, %v367_v21 }
  0xff   :  { %v211_v35 = vsub.s32 0, %v1322_v25  ;;  %v376_v38 = vshll.u32 %v1148_v50, %v367_v21  ;;  %v309_v39 = vadd.s32 %v308_v36, %v304_v29  ;;  %v379_v44 = vshll.u32 %v1149_v52, %v367_v21 }
 0x100   :  { %v369_v23 = vshrl.u32 %v1146_v45, %v368_v33  ;;  %v371_v40 = vshrl.u32 %v1147_v47, %v368_v33  ;;  %v374_v42 = vshrl.u32 %v1148_v50, %v368_v33  ;;  %v377_v43 = vshrl.u32 %v1149_v52, %v368_v33 }
 0x101   :  { %v975_v41 = vmin.u32 %v211_v35, %v1322_v25  ;;  %v380_v46 = vshrl.u32 %v1150_v54, %v368_v33  ;;  %v310_v48 = vadd.s32 536870912, %v309_v39  ;;  %v382_v53 = vshll.u32 %v1150_v54, %v367_v21 }
 0x102   :  { %v372_v49 = vor.u32 %v371_v40, %v370_v34  ;;  %v375_v51 = vor.u32 %v374_v42, %v373_v37  ;;  %v378_v56 = vor.u32 %v377_v43, %v376_v38  ;;  %v383_v58 = vshrl.u32 %v1151_v61, %v368_v33 }
 0x103   :  { %v213_v55 = vclz %v975_v41  ;;  %v381_v57 = vor.u32 %v380_v46, %v379_v44  ;;  %v1344_v60 = vshrl.u32 %v310_v48, 30  ;;  %vm385_vm0 = vcmp.lt.s32.totalorder %v366_v13, 1 }
 0x104   :  { %v384_v0 = vor.u32 %v383_v58, %v382_v53  ;;  %vm387_vm2 = vcmp.lt.s32.totalorder %v366_v13, 3  ;;  %vm388_vm3 = vcmp.lt.s32.totalorder %v366_v13, 4  ;;  %v393_v4 = vsel %vm385_vm0, %v372_v49, %v375_v51 }
 0x105   :  { %v976_v63 = vadd.s32 4294967294, %v213_v55  ;;  %v312_v1 = vshll.u32 %v1344_v60, 30  ;;  %v390_v3 = vsel %vm388_vm3, %v378_v56, 2102212464  ;;  %v394_v5 = vsel %vm388_vm3, %v381_v57, 920167782 }
 0x106   :  { %vm386_vm5 = vcmp.lt.s32.totalorder %v366_v13, 2  ;;  %v389_v27 = vsel %vm385_vm0, %v369_v23, %v372_v49  ;;  %v395_v28 = vsel %vm387_vm2, %v378_v56, %v394_v5  ;;  %v397_v10 = vsel %vm385_vm0, %v375_v51, %v378_v56 }
 0x107   :  { %vm977_vm4 = vcmp.lt.s32.totalorder %v976_v63, 0  ;;  %v313_v7 = vsub.s32 %v309_v39, %v312_v1  ;;  %v396_v8 = vsel %vm386_vm5, %v393_v4, %v395_v28  ;;  %v391_v16 = vsel %vm387_vm2, %v375_v51, %v390_v3 }
 0x108   :  { %v216_v6 = vsel %vm977_vm4, 0, %v976_v63  ;;  %v398_v19 = vsel %vm388_vm3, %v384_v0, 1326507024  ;;  %v1357_v29 = vmul.u32.u64.low %v401_v62, %v396_v8  ;;  %v1358_v30 = vmul.u32.u64.high %v401_v62, %v396_v8, %v1357_v29 }
 0x109   :  { %v217_v12 = vsub.s32 32, %v216_v6  ;;  %v221_v14 = vsub.s32 4294967266, %v216_v6  ;;  %v315_v20 = vsub.s32 0, %v313_v7  ;;  %v399_v21 = vsel %vm387_vm2, %v381_v57, %v398_v19 }
 0x10a   :  { %v218_v32 = vshll.u32 %v1322_v25, %v216_v6  ;;  %v400_v35 = vsel %vm386_vm5, %v397_v10, %v399_v21  ;;  %v392_v40 = vsel %vm386_vm5, %v389_v27, %v391_v16  ;;  %v411_v41 = vadd.s32 1, %v1358_v30 }
 0x10b   :  { %v219_v33 = vshrl.u32 %v201_v59, %v217_v12  ;;  %v222_v34 = vadd.s32 127, %v221_v14  ;;  %v979_v36 = vmin.u32 %v315_v20, %v313_v7  ;;  %v408_v46 = vmul.u32 %v401_v62, %v392_v40 }
 0x10c   :  { %v1363_v37 = vmul.u32.u64.low %v401_v62, %v400_v35  ;;  %v1364_v38 = vmul.u32.u64.high %v401_v62, %v400_v35, %v1363_v37  ;;  %v231_v13 = vsub.s32 4, %v1308_v9  ;;  %v305_v56 = vadd.s32 %v1312_v11, %v1319_v18 }
 0x10d   :  { %v220_v39 = vor.u32 %v219_v33, %v218_v32  ;;  %v223_v23 = vshll.u32 %v222_v34, 23  ;;  %v317_v42 = vclz %v979_v36  ;;  %vm147_vm8 = vcmp.lt.s32.totalorder %v1237_v15, 0 }
 0x10e   :  { %vm410_vm6 = vc.u32 %v1364_v38, %v1357_v29  ;;  %vm146_vm9 = vcmp.le.f32.partialorder %v145_v17, 0.7853982  ;;  %v232_v5 = vsel %vm147_vm8, %v231_v13, %v1308_v9  ;;  %v335_v19 = vsub.s32 4, %v1344_v60 }
 0x10f   :  { %v224_v43 = vor.u32 4788187, %v223_v23  ;;  %v980_v44 = vadd.s32 4294967294, %v317_v42  ;;  %v227_v48 = vcvt.s32.f32 %v220_v39  ;;  %v412_v49 = vsel %vm410_vm6, %v411_v41, %v1358_v30 }
 0x110   :  { %v413_v51 = vadd.s32 %v412_v49, %v408_v46  ;;  %vm251_vm10 = vcmp.lt.s32.totalorder %v1241_v22, 0  ;;  %vm1387_vm11 = vcmp.le.f32.partialorder %v249_v26, 0.7853982  ;;  %v409_v37 = vadd.s32 %v1357_v29, %v1364_v38 }
 0x111   :  { %v225_v25 = vand.u32 2147483647, %v224_v43  ;;  %vm981_vm7 = vcmp.lt.s32.totalorder %v980_v44, 0  ;;  %v336_v32 = vsel %vm251_vm10, %v335_v19, %v1344_v60  ;;  %vm237_vm15 = vweird.f32 %v1237_v15 }
 0x112   :  { %v320_v55 = vsel %vm981_vm7, 0, %v980_v44  ;;  %v414_v59 = vadd.s32 536870912, %v413_v51  ;;  %v338_v60 = vsel %vm1387_vm11, 0, %v336_v32  ;;  %vm355_vm5 = vcmp.lt.s32.totalorder %v1247_v31, 0  ;;  %v466_v32 = vpop.permute.xlu1 %465 }
 0x113   :  { %v228_v53 = vmul.f32 %v227_v48, %v225_v25  ;;  %v321_v57 = vsub.s32 32, %v320_v55  ;;  %v325_v58 = vsub.s32 4294967266, %v320_v55  ;;  %v322_v63 = vshll.u32 %v313_v7, %v320_v55 }
 0x114   :  { %v1375_v3 = vshrl.u32 %v414_v59, 30  ;;  %v234_v7 = vsel %vm146_vm9, 0, %v232_v5  ;;  %v342_v38 = vadd.s32 3, %v338_v60  ;;  %vm341_vm6 = vweird.f32 %v1241_v22 }
 0x115   :  { %v229_v62 = vxor.u32 2147483648, %v228_v53  ;;  %v323_v0 = vshrl.u32 %v305_v56, %v321_v57  ;;  %v326_v1 = vadd.s32 127, %v325_v58  ;;  %v238_v16 = vadd.s32 3, %v234_v7 }
 0x116   :  { %v416_v11 = vshll.u32 %v1375_v3, 30  ;;  %v343_v56 = vand.u32 3, %v342_v38  ;;  %vm354_vm7 = vcmp.le.f32.partialorder %v353_v24, 0.7853982  ;;  %v476_v38 = vpop.permute.xlu1 %475 }
 0x117   :  { %v230_v4 = vsel %vm147_vm8, %v229_v62, %v228_v53  ;;  %v324_v27 = vor.u32 %v323_v0, %v322_v63  ;;  %v327_v28 = vshll.u32 %v326_v1, 23  ;;  %v239_v30 = vand.u32 3, %v238_v16 }
 0x118   :  { %v233_v18 = vsel %vm146_vm9, %v1237_v15, %v230_v4  ;;  %v417_v8 = vsub.s32 %v413_v51, %v416_v11  ;;  %vm348_vm2 = vcmp.eq.s32.totalorder %v343_v56, 2  ;;  %v439_v15 = vsub.s32 4, %v1375_v3 }
 0x119   :  { %1094 = vcosq.f32 %v233_v18  ;;  %v328_v6 = vor.u32 4788187, %v327_v28  ;;  %v331_v12 = vcvt.s32.f32 %v324_v27  ;;  %vm244_vm13 = vcmp.eq.s32.totalorder %v239_v30, 2 }
 0x11a   :  { %1096 = vsinq.f32 %v233_v18  ;;  %v419_v14 = vsub.s32 0, %v417_v8  ;;  %vm241_vm14 = vcmp.eq.s32.totalorder %v239_v30, 0  ;;  %vm240_vm0 = vcmp.lt.s32.totalorder %v239_v30, 2  ;;  %v458_v30 = vld [vmem:[%s1602_s4 + $0x8] sm:$0xff] }
 0x11b   :  { %v329_v10 = vand.u32 2147483647, %v328_v6  ;;  %vm345_vm3 = vcmp.eq.s32.totalorder %v343_v56, 0  ;;  %vm344_vm4 = vcmp.lt.s32.totalorder %v343_v56, 2  ;;  %v440_v6 = vsel %vm355_vm5, %v439_v15, %v1375_v3 }
 0x11c   :  { %v983_v20 = vmin.u32 %v419_v14, %v417_v8 }
 0x11d   :  { %v332_v17 = vmul.f32 %v331_v12, %v329_v10  ;;  %v442_v10 = vsel %vm354_vm7, 0, %v440_v6 }
 0x11e   :  { %v421_v21 = vclz %v983_v20  ;;  %v446_v12 = vadd.s32 3, %v442_v10 }
 0x11f   :  { %v333_v9 = vxor.u32 2147483648, %v332_v17 }
 0x120   :  { %v984_v34 = vadd.s32 4294967294, %v421_v21  ;;  %v447_v14 = vand.u32 3, %v446_v12 }
 0x121   :  { %v334_v33 = vsel %vm251_vm10, %v333_v9, %v332_v17  ;;  %v457_v9 = vld [vmem:[%s1602_s4] sm:$0xff] }
 0x122   :  { %v337_v39 = vsel %vm1387_vm11, %v1241_v22, %v334_v33  ;;  %vm985_vm12 = vcmp.lt.s32.totalorder %v984_v34, 0  ;;  %vm452_vm8 = vcmp.eq.s32.totalorder %v447_v14, 2  ;;  %vm449_vm9 = vcmp.eq.s32.totalorder %v447_v14, 0 }
 0x123   :  { %v1095_v36 = vpop.eup %1094  ;;  %1098 = vcosq.f32 %v337_v39  ;;  %v424_v42 = vsel %vm985_vm12, 0, %v984_v34  ;;  %vm448_vm10 = vcmp.lt.s32.totalorder %v447_v14, 2  ;;  %vm445_vm11 = vweird.f32 %v1247_v31 }
 0x124   :  { %v1097_v23 = vpop.eup %1096  ;;  %v245_v40 = vxor.u32 2147483648, %v1095_v36  ;;  %1100 = vsinq.f32 %v337_v39  ;;  %v425_v41 = vsub.s32 32, %v424_v42  ;;  %v429_v43 = vsub.s32 4294967266, %v424_v42  ;;  %v471_v39 = vpop.permute.xlu0 %470 }
 0x125   :  { %v242_v26 = vxor.u32 2147483648, %v1097_v23  ;;  %v426_v46 = vshll.u32 %v417_v8, %v424_v42  ;;  %vm478_vm12 = vcmask 195584  }
 0x126   :  { %v246_v44 = vsel %vm244_vm13, %v245_v40, %v1097_v23  ;;  %v427_v25 = vshrl.u32 %v409_v37, %v425_v41  ;;  %v430_v48 = vadd.s32 127, %v429_v43 }
 0x127   :  { %v243_v29 = vsel %vm241_vm14, %v1095_v36, %v242_v26 }
 0x128   :  { %v247_v49 = vsel %vm240_vm0, %v243_v29, %v246_v44  ;;  %v428_v53 = vor.u32 %v427_v25, %v426_v46  ;;  %v431_v55 = vshll.u32 %v430_v48, 23 }
 0x129   :  { %v248_v51 = vsel %vm237_vm15, nan, %v247_v49 }
 0x12a   :  { %v432_v13 = vor.u32 4788187, %v431_v55  ;;  %v435_v59 = vcvt.s32.f32 %v428_v53 }
 0x12c   :  { %v433_v58 = vand.u32 2147483647, %v432_v13 }
 0x12d   :  { %v1099_v57 = vpop.eup %1098 }
 0x12e   :  { %v1101_v62 = vpop.eup %1100  ;;  %v349_v63 = vxor.u32 2147483648, %v1099_v57  ;;  %v436_v0 = vmul.f32 %v435_v59, %v433_v58 }
 0x12f   :  { %v346_v1 = vxor.u32 2147483648, %v1101_v62 }
 0x130   :  { %v350_v4 = vsel %vm348_vm2, %v349_v63, %v1101_v62  ;;  %v437_v5 = vxor.u32 2147483648, %v436_v0 }
 0x131   :  { %v347_v27 = vsel %vm345_vm3, %v1099_v57, %v346_v1 }
 0x132   :  { %v351_v28 = vsel %vm344_vm4, %v347_v27, %v350_v4  ;;  %v438_v11 = vsel %vm355_vm5, %v437_v5, %v436_v0 }
 0x133   :  { %v352_v18 = vsel %vm341_vm6, nan, %v351_v28  ;;  %v441_v7 = vsel %vm354_vm7, %v1247_v31, %v438_v11  ;;  %v459_v31 = vld [vmem:[%s1602_s4 + $0x10] sm:$0xff] }
 0x134   :  { %v1052_v8 = vpack.c.bf16 %v352_v18, %v248_v51  ;;  %1102 = vcosq.f32 %v441_v7 }
 0x135   :  { %1104 = vsinq.f32 %v441_v7 }
 0x136   :  { %1053 = vmatpush3.bf16.msra.mxu1 %v1052_v8 }
 0x137   :  { %1031 = vmatprep.subr.mxu1 %v1142_v2 }
 0x13e   :  { %v1103_v22 = vpop.eup %1102 }
 0x13f   :  { %v1105_v16 = vpop.eup %1104  ;;  %v453_v19 = vxor.u32 2147483648, %v1103_v22 }
 0x140   :  { %v450_v17 = vxor.u32 2147483648, %v1105_v16 }
 0x141   :  { %v454_v24 = vsel %vm452_vm8, %v453_v19, %v1105_v16 }
 0x142   :  { %v451_v3 = vsel %vm449_vm9, %v1103_v22, %v450_v17 }
 0x143   :  { %v455_v20 = vsel %vm448_vm10, %v451_v3, %v454_v24 }
 0x144   :  { %v456_v21 = vsel %vm445_vm11, nan, %v455_v20 }
 0x145   :  { %1032 = vmatpush3.msra.mxu1 %v456_v21 }
 0x146   :  { %1034 = vmatmul.mubr.msk.f32.vlgmr.msra.gmra.mrb[0].mxu1 %vm478_vm12, %v457_v9 }
 0x147   :  { %1036 = vmatprep.mubr.msk.f32.mxu1 %vm1143_vm1, %v1142_v2 }
 0x14a   :  { %1037 = vmatmul.mubr.msk.f32.gmra.mrb[2].mxu1 %vm478_vm12, %v458_v30 }
 0x14b   :  { %1039 = vmatprep.mubr.msk.f32.mxu1 %vm1143_vm1, %v1142_v2 }
 0x14e   :  { %1040 = vmatmul.mubr.msk.f32.gmra.mrb[4].mxu1 %vm478_vm12, %v459_v31 }
 0x219   :  { %v554_v33 = vpop.f32.mrb[0].mxu1 }
 0x21a   :  { %v1424_v34 = vadd.f32 %v554_v33, %v466_v32  ;;  %v1035_v35 = vpop.f32.mrb[1].mxu1 }
 0x21c   :  { %v568_v36 = vand.u32 2147483647, %v1424_v34  ;;  %v571_v37 = vand.u32 2139095040, %v1424_v34 }
 0x21d   :  { %v559_v23 = vpop.f32.mrb[2].mxu1 }
 0x21e   :  { %v572_v40 = vshrl.u32 %v571_v37, 23  ;;  %v1428_v60 = vadd.f32 %v559_v23, %v471_v39  ;;  %v1038_v42 = vpop.f32.mrb[3].mxu1  ;;  %v575_v26 = vand.u32 8388607, %v568_v36 }
 0x220   :  { %v989_v41 = vadd.s32 4294967169, %v572_v40  ;;  %v672_v43 = vand.u32 2147483647, %v1428_v60  ;;  %v675_v44 = vand.u32 2139095040, %v1428_v60  ;;  %v576_v25 = vor.u32 8388608, %v575_v26 }
 0x221   :  { %v564_v29 = vpop.f32.mrb[4].mxu1 }
 0x222   :  { %v578_v46 = vadd.s32 1, %v989_v41  ;;  %v676_v48 = vshrl.u32 %v675_v44, 23  ;;  %v679_v49 = vand.u32 8388607, %v672_v43  ;;  %v1436_v51 = vadd.f32 %v564_v29, %v476_v38  ;;  %v1041_v53 = vpop.f32.mrb[5].mxu1 }
 0x223   :  { %v1438_v58 = vshll.u32 %v576_v25, 8 }
 0x224   :  { %vm579_vm1 = vcmp.gt.s32.totalorder %v578_v46, 0  ;;  %v993_v13 = vadd.s32 4294967169, %v676_v48  ;;  %v680_v59 = vor.u32 8388608, %v679_v49  ;;  %v779_v62 = vand.u32 2139095040, %v1436_v51 }
 0x225   :  { %v580_v55 = vsel %vm579_vm1, %v578_v46, 0  ;;  %v776_v40 = vand.u32 2147483647, %v1436_v51 }
 0x226   :  { %v581_v56 = vshrl.u32 %v580_v55, 5  ;;  %v582_v57 = vand.u32 31, %v580_v55  ;;  %v682_v15 = vadd.s32 1, %v993_v13  ;;  %v720_v46 = vshll.u32 %v680_v59, 8 }
 0x227   :  { %v780_v25 = vshrl.u32 %v779_v62, 23 }
 0x228   :  { %v583_v63 = vsub.s32 32, %v582_v57  ;;  %v585_v0 = vshll.u32 %v1146_v45, %v582_v57  ;;  %v588_v1 = vshll.u32 %v1147_v47, %v582_v57  ;;  %v591_v4 = vshll.u32 %v1148_v50, %v582_v57 }
 0x229   :  { %v594_v5 = vshll.u32 %v1149_v52, %v582_v57  ;;  %v597_v27 = vshll.u32 %v1150_v54, %v582_v57  ;;  %vm600_vm13 = vcmp.lt.s32.totalorder %v581_v56, 1  ;;  %vm601_vm14 = vcmp.lt.s32.totalorder %v581_v56, 2 }
 0x22a   :  { %v586_v28 = vshrl.u32 %v1147_v47, %v583_v63  ;;  %v589_v11 = vshrl.u32 %v1148_v50, %v583_v63  ;;  %v592_v18 = vshrl.u32 %v1149_v52, %v583_v63  ;;  %v584_v6 = vshrl.u32 %v1146_v45, %v583_v63 }
 0x22b   :  { %v595_v8 = vshrl.u32 %v1150_v54, %v583_v63  ;;  %v598_v7 = vshrl.u32 %v1151_v61, %v583_v63  ;;  %vm602_vm15 = vcmp.lt.s32.totalorder %v581_v56, 3  ;;  %vm683_vm0 = vcmp.gt.s32.totalorder %v682_v15, 0 }
 0x22c   :  { %v587_v10 = vor.u32 %v586_v28, %v585_v0  ;;  %v590_v12 = vor.u32 %v589_v11, %v588_v1  ;;  %v593_v14 = vor.u32 %v592_v18, %v591_v4  ;;  %vm603_vm2 = vcmp.lt.s32.totalorder %v581_v56, 4 }
 0x22d   :  { %v596_v22 = vor.u32 %v595_v8, %v594_v5  ;;  %v599_v16 = vor.u32 %v598_v7, %v597_v27  ;;  %v684_v19 = vsel %vm683_vm0, %v682_v15, 0 }
 0x22e   :  { %v604_v17 = vsel %vm600_vm13, %v584_v6, %v587_v10  ;;  %v605_v24 = vsel %vm603_vm2, %v593_v14, 2102212464  ;;  %v608_v3 = vsel %vm600_vm13, %v587_v10, %v590_v12  ;;  %v612_v20 = vsel %vm600_vm13, %v590_v12, %v593_v14 }
 0x22f   :  { %v606_v9 = vsel %vm602_vm15, %v590_v12, %v605_v24  ;;  %v609_v21 = vsel %vm603_vm2, %v596_v22, 920167782  ;;  %v613_v30 = vsel %vm603_vm2, %v599_v16, 1326507024  ;;  %v685_v31 = vshrl.u32 %v684_v19, 5 }
 0x230   :  { %v607_v32 = vsel %vm601_vm14, %v604_v17, %v606_v9  ;;  %v610_v33 = vsel %vm602_vm15, %v593_v14, %v609_v21  ;;  %v614_v35 = vsel %vm602_vm15, %v596_v22, %v613_v30  ;;  %v686_v37 = vand.u32 31, %v684_v19 }
 0x231   :  { %v611_v39 = vsel %vm601_vm14, %v608_v3, %v610_v33  ;;  %v615_v23 = vsel %vm601_vm14, %v612_v20, %v614_v35  ;;  %v623_v29 = vmul.u32 %v1438_v58, %v607_v32  ;;  %vm704_vm3 = vcmp.lt.s32.totalorder %v685_v31, 1 }
 0x232   :  { %v1463_v42 = vmul.u32.u64.low %v1438_v58, %v615_v23  ;;  %v1464_v26 = vmul.u32.u64.high %v1438_v58, %v615_v23, %v1463_v42  ;;  %v1467_v41 = vmul.u32.u64.low %v1438_v58, %v611_v39  ;;  %v1468_v44 = vmul.u32.u64.high %v1438_v58, %v611_v39, %v1467_v41 }
 0x233   :  { %v687_v38 = vsub.s32 32, %v686_v37  ;;  %v689_v48 = vshll.u32 %v1146_v45, %v686_v37  ;;  %v692_v49 = vshll.u32 %v1147_v47, %v686_v37  ;;  %v695_v53 = vshll.u32 %v1148_v50, %v686_v37 }
 0x234   :  { %v698_v57 = vshll.u32 %v1149_v52, %v686_v37  ;;  %vm625_vm4 = vc.u32 %v1464_v26, %v1467_v41  ;;  %v626_v58 = vadd.s32 1, %v1468_v44  ;;  %v701_v62 = vshll.u32 %v1150_v54, %v686_v37 }
 0x235   :  { %v690_v55 = vshrl.u32 %v1147_v47, %v687_v38  ;;  %v693_v13 = vshrl.u32 %v1148_v50, %v687_v38  ;;  %v696_v56 = vshrl.u32 %v1149_v52, %v687_v38  ;;  %v699_v59 = vshrl.u32 %v1150_v54, %v687_v38 }
 0x236   :  { %v702_v15 = vshrl.u32 %v1151_v61, %v687_v38  ;;  %v627_v4 = vsel %vm625_vm4, %v626_v58, %v1468_v44  ;;  %vm706_vm5 = vcmp.lt.s32.totalorder %v685_v31, 3  ;;  %vm707_vm6 = vcmp.lt.s32.totalorder %v685_v31, 4 }
 0x237   :  { %v691_v63 = vor.u32 %v690_v55, %v689_v48  ;;  %v694_v0 = vor.u32 %v693_v13, %v692_v49  ;;  %v697_v1 = vor.u32 %v696_v56, %v695_v53  ;;  %v700_v5 = vor.u32 %v699_v59, %v698_v57 }
 0x238   :  { %v628_v27 = vadd.s32 %v627_v4, %v623_v29  ;;  %v688_v28 = vshrl.u32 %v1146_v45, %v687_v38  ;;  %v703_v11 = vor.u32 %v702_v15, %v701_v62  ;;  %v997_v10 = vadd.s32 4294967169, %v780_v25 }
 0x239   :  { %v709_v18 = vsel %vm707_vm6, %v697_v1, 2102212464  ;;  %v712_v6 = vsel %vm704_vm3, %v691_v63, %v694_v0  ;;  %v713_v8 = vsel %vm707_vm6, %v700_v5, 920167782  ;;  %v716_v7 = vsel %vm704_vm3, %v694_v0, %v697_v1 }
 0x23a   :  { %v629_v12 = vadd.s32 536870912, %v628_v27  ;;  %vm705_vm7 = vcmp.lt.s32.totalorder %v685_v31, 2  ;;  %v714_v14 = vsel %vm706_vm5, %v697_v1, %v713_v8  ;;  %v717_v22 = vsel %vm707_vm6, %v703_v11, 1326507024 }
 0x23b   :  { %v708_v16 = vsel %vm704_vm3, %v688_v28, %v691_v63  ;;  %v710_v19 = vsel %vm706_vm5, %v694_v0, %v709_v18  ;;  %v715_v17 = vsel %vm705_vm7, %v712_v6, %v714_v14  ;;  %v718_v24 = vsel %vm706_vm5, %v700_v5, %v717_v22 }
 0x23c   :  { %v1491_v3 = vshrl.u32 %v629_v12, 30  ;;  %v719_v20 = vsel %vm705_vm7, %v716_v7, %v718_v24  ;;  %v1493_v9 = vmul.u32.u64.low %v720_v46, %v715_v17  ;;  %v1494_v21 = vmul.u32.u64.high %v720_v46, %v715_v17, %v1493_v9 }
 0x23d   :  { %v1497_v30 = vmul.u32.u64.low %v720_v46, %v719_v20  ;;  %v1498_v32 = vmul.u32.u64.high %v720_v46, %v719_v20, %v1497_v30  ;;  %v786_v33 = vadd.s32 1, %v997_v10  ;;  %v711_v37 = vsel %vm705_vm7, %v708_v16, %v710_v19 }
 0x23e   :  { %v631_v35 = vshll.u32 %v1491_v3, 30  ;;  %v730_v23 = vadd.s32 1, %v1494_v21  ;;  %v783_v31 = vand.u32 8388607, %v776_v40  ;;  %v727_v44 = vmul.u32 %v720_v46, %v711_v37 }
 0x23f   :  { %vm787_vm8 = vcmp.gt.s32.totalorder %v786_v33, 0  ;;  %vm729_vm9 = vc.u32 %v1498_v32, %v1493_v9  ;;  %v624_v48 = vadd.s32 %v1467_v41, %v1464_v26  ;;  %vm570_vm2 = vcmp.lt.s32.totalorder %v1424_v34, 0 }
 0x240   :  { %v632_v39 = vsub.s32 %v628_v27, %v631_v35  ;;  %v788_v42 = vsel %vm787_vm8, %v786_v33, 0  ;;  %v731_v38 = vsel %vm729_vm9, %v730_v23, %v1494_v21  ;;  %v784_v55 = vor.u32 8388608, %v783_v31 }
 0x241   :  { %v790_v25 = vand.u32 31, %v788_v42  ;;  %v732_v49 = vadd.s32 %v731_v38, %v727_v44  ;;  %v789_v13 = vshrl.u32 %v788_v42, 5  ;;  %vm569_vm3 = vcmp.le.f32.partialorder %v568_v36, 0.7853982 }
 0x242   :  { %v634_v29 = vsub.s32 0, %v632_v39  ;;  %v824_v11 = vshll.u32 %v784_v55, 8  ;;  %vm674_vm4 = vcmp.lt.s32.totalorder %v1428_v60, 0  ;;  %vm1558_vm5 = vcmp.le.f32.partialorder %v672_v43, 0.7853982 }
 0x243   :  { %v791_v56 = vsub.s32 32, %v790_v25  ;;  %v733_v57 = vadd.s32 536870912, %v732_v49  ;;  %v793_v58 = vshll.u32 %v1146_v45, %v790_v25  ;;  %v796_v59 = vshll.u32 %v1147_v47, %v790_v25 }
 0x244   :  { %v990_v53 = vmin.u32 %v634_v29, %v632_v39  ;;  %v799_v46 = vshll.u32 %v1148_v50, %v790_v25  ;;  %v802_v1 = vshll.u32 %v1149_v52, %v790_v25  ;;  %vm808_vm11 = vcmp.lt.s32.totalorder %v789_v13, 1 }
 0x245   :  { %v794_v63 = vshrl.u32 %v1147_v47, %v791_v56  ;;  %v797_v0 = vshrl.u32 %v1148_v50, %v791_v56  ;;  %v1514_v26 = vshrl.u32 %v733_v57, 30  ;;  %v800_v41 = vshrl.u32 %v1149_v52, %v791_v56 }
 0x246   :  { %v636_v62 = vclz %v990_v53  ;;  %v803_v15 = vshrl.u32 %v1150_v54, %v791_v56  ;;  %v806_v4 = vshrl.u32 %v1151_v61, %v791_v56  ;;  %v805_v50 = vshll.u32 %v1150_v54, %v790_v25 }
 0x247   :  { %v795_v27 = vor.u32 %v794_v63, %v793_v58  ;;  %v798_v28 = vor.u32 %v797_v0, %v796_v59  ;;  %v735_v18 = vshll.u32 %v1514_v26, 30  ;;  %v801_v6 = vor.u32 %v800_v41, %v799_v46 }
 0x248   :  { %v991_v5 = vadd.s32 4294967294, %v636_v62  ;;  %v804_v47 = vor.u32 %v803_v15, %v802_v1  ;;  %vm809_vm1 = vcmp.lt.s32.totalorder %v789_v13, 2  ;;  %vm810_vm13 = vcmp.lt.s32.totalorder %v789_v13, 3 }
 0x249   :  { %v736_v52 = vsub.s32 %v732_v49, %v735_v18  ;;  %v792_v7 = vshrl.u32 %v1146_v45, %v791_v56  ;;  %v807_v10 = vor.u32 %v806_v4, %v805_v50  ;;  %vm811_vm14 = vcmp.lt.s32.totalorder %v789_v13, 4 }
 0x24a   :  { %vm992_vm10 = vcmp.lt.s32.totalorder %v991_v5, 0  ;;  %v816_v14 = vsel %vm808_vm11, %v795_v27, %v798_v28  ;;  %v813_v19 = vsel %vm811_vm14, %v801_v6, 2102212464  ;;  %v817_v17 = vsel %vm811_vm14, %v804_v47, 920167782 }
 0x24b   :  { %v639_v8 = vsel %vm992_vm10, 0, %v991_v5  ;;  %v738_v22 = vsub.s32 0, %v736_v52  ;;  %v812_v16 = vsel %vm808_vm11, %v792_v7, %v795_v27  ;;  %v818_v21 = vsel %vm810_vm13, %v801_v6, %v817_v17 }
 0x24c   :  { %v640_v61 = vsub.s32 32, %v639_v8  ;;  %v644_v12 = vsub.s32 4294967266, %v639_v8  ;;  %v641_v54 = vshll.u32 %v632_v39, %v639_v8  ;;  %v819_v33 = vsel %vm809_vm1, %v816_v14, %v818_v21 }
 0x24d   :  { %v994_v30 = vmin.u32 %v738_v22, %v736_v52  ;;  %v820_v45 = vsel %vm808_vm11, %v798_v28, %v801_v6  ;;  %v821_v35 = vsel %vm811_vm14, %v807_v10, 1326507024  ;;  %v814_v31 = vsel %vm810_vm13, %v798_v28, %v813_v19 }
 0x24e   :  { %v642_v24 = vshrl.u32 %v624_v48, %v640_v61  ;;  %v645_v20 = vadd.s32 127, %v644_v12  ;;  %v822_v42 = vsel %vm810_vm13, %v804_v47, %v821_v35  ;;  %v815_v55 = vsel %vm809_vm1, %v812_v16, %v814_v31 }
 0x24f   :  { %v740_v44 = vclz %v994_v30  ;;  %v823_v29 = vsel %vm809_vm1, %v820_v45, %v822_v42  ;;  %v1530_v39 = vmul.u32.u64.low %v824_v11, %v819_v33  ;;  %v1531_v38 = vmul.u32.u64.high %v824_v11, %v819_v33, %v1530_v39 }
 0x250   :  { %v643_v37 = vor.u32 %v642_v24, %v641_v54  ;;  %v646_v23 = vshll.u32 %v645_v20, 23  ;;  %v1534_v48 = vmul.u32.u64.low %v824_v11, %v823_v29  ;;  %v1535_v49 = vmul.u32.u64.high %v824_v11, %v823_v29, %v1534_v48 }
 0x251   :  { %v995_v53 = vadd.s32 4294967294, %v740_v44  ;;  %v654_v58 = vsub.s32 4, %v1491_v3  ;;  %v834_v59 = vadd.s32 1, %v1531_v38  ;;  %v831_v63 = vmul.u32 %v824_v11, %v815_v55 }
 0x252   :  { %v647_v25 = vor.u32 4788187, %v646_v23  ;;  %v650_v57 = vcvt.s32.f32 %v643_v37  ;;  %vm833_vm0 = vc.u32 %v1535_v49, %v1530_v39  ;;  %v728_v0 = vadd.s32 %v1493_v9, %v1498_v32 }
 0x253   :  { %vm996_vm15 = vcmp.lt.s32.totalorder %v995_v53, 0  ;;  %v835_v13 = vsel %vm833_vm0, %v834_v59, %v1531_v38  ;;  %v655_v18 = vsel %vm570_vm2, %v654_v58, %v1491_v3  ;;  %v758_v36 = vsub.s32 4, %v1514_v26 }
 0x254   :  { %v648_v56 = vand.u32 2147483647, %v647_v25  ;;  %v743_v62 = vsel %vm996_vm15, 0, %v995_v53  ;;  %v836_v4 = vadd.s32 %v835_v13, %v831_v63  ;;  %v657_v8 = vsel %vm569_vm3, 0, %v655_v18 }
 0x255   :  { %v744_v1 = vsub.s32 32, %v743_v62  ;;  %v748_v41 = vsub.s32 4294967266, %v743_v62  ;;  %v745_v5 = vshll.u32 %v736_v52, %v743_v62  ;;  %v661_v12 = vadd.s32 3, %v657_v8 }
 0x256   :  { %v651_v46 = vmul.f32 %v650_v57, %v648_v56  ;;  %v837_v6 = vadd.s32 536870912, %v836_v4  ;;  %v759_v19 = vsel %vm674_vm4, %v758_v36, %v1514_v26  ;;  %vm660_vm10 = vweird.f32 %v1424_v34 }
 0x257   :  { %v746_v27 = vshrl.u32 %v728_v0, %v744_v1  ;;  %v749_v28 = vadd.s32 127, %v748_v41  ;;  %v662_v54 = vand.u32 3, %v661_v12  ;;  %v761_v35 = vsel %vm1558_vm5, 0, %v759_v19 }
 0x258   :  { %v652_v15 = vxor.u32 2147483648, %v651_v46  ;;  %v1550_v50 = vshrl.u32 %v837_v6, 30  ;;  %v765_v42 = vadd.s32 3, %v761_v35  ;;  %v832_v38 = vadd.s32 %v1530_v39, %v1535_v49 }
 0x259   :  { %v747_v32 = vor.u32 %v746_v27, %v745_v5  ;;  %v750_v47 = vshll.u32 %v749_v28, 23  ;;  %vm667_vm6 = vcmp.eq.s32.totalorder %v662_v54, 2  ;;  %vm664_vm7 = vcmp.eq.s32.totalorder %v662_v54, 0 }
 0x25a   :  { %v653_v11 = vsel %vm570_vm2, %v652_v15, %v651_v46  ;;  %v839_v52 = vshll.u32 %v1550_v50, 30  ;;  %vm663_vm9 = vcmp.lt.s32.totalorder %v662_v54, 2  ;;  %v766_v58 = vand.u32 3, %v765_v42 }
 0x25b   :  { %v656_v9 = vsel %vm569_vm3, %v1424_v34, %v653_v11  ;;  %v751_v7 = vor.u32 4788187, %v750_v47  ;;  %v754_v61 = vcvt.s32.f32 %v747_v32  ;;  %vm764_vm14 = vweird.f32 %v1428_v60 }
 0x25c   :  { %1106 = vcosq.f32 %v656_v9  ;;  %v840_v14 = vsub.s32 %v836_v4, %v839_v52  ;;  %vm771_vm11 = vcmp.eq.s32.totalorder %v766_v58, 2  ;;  %vm768_vm1 = vcmp.eq.s32.totalorder %v766_v58, 0 }
 0x25d   :  { %1108 = vsinq.f32 %v656_v9  ;;  %v752_v10 = vand.u32 2147483647, %v751_v7  ;;  %vm767_vm13 = vcmp.lt.s32.totalorder %v766_v58, 2  ;;  %v862_v5 = vsub.s32 4, %v1550_v50 }
 0x25e   :  { %v842_v22 = vsub.s32 0, %v840_v14  ;;  %vm778_vm15 = vcmp.lt.s32.totalorder %v1436_v51, 0  ;;  %vm777_vm0 = vcmp.le.f32.partialorder %v776_v40, 0.7853982  ;;  %v881_v36 = vstv %s1598_s0 }
 0x25f   :  { %v755_v3 = vmul.f32 %v754_v61, %v752_v10  ;;  %v863_v6 = vsel %vm778_vm15, %v862_v5, %v1550_v50 }
 0x260   :  { %v998_v17 = vmin.u32 %v842_v22, %v840_v14 }
 0x261   :  { %v756_v16 = vxor.u32 2147483648, %v755_v3 }
 0x262   :  { %v844_v33 = vclz %v998_v17 }
 0x263   :  { %v757_v20 = vsel %vm674_vm4, %v756_v16, %v755_v3 }
 0x264   :  { %v760_v30 = vsel %vm1558_vm5, %v1428_v60, %v757_v20  ;;  %v999_v37 = vadd.s32 4294967294, %v844_v33  ;;  %v865_v60 = vsel %vm777_vm0, 0, %v863_v6  ;;  %vm868_vm5 = vweird.f32 %v1436_v51 }
 0x265   :  { %1110 = vcosq.f32 %v760_v30  ;;  %v869_v32 = vadd.s32 3, %v865_v60 }
 0x266   :  { %v1107_v21 = vpop.eup %1106  ;;  %1112 = vsinq.f32 %v760_v30  ;;  %vm1000_vm8 = vcmp.lt.s32.totalorder %v999_v37, 0 }
 0x267   :  { %v1109_v45 = vpop.eup %1108  ;;  %v668_v26 = vxor.u32 2147483648, %v1107_v21  ;;  %v847_v44 = vsel %vm1000_vm8, 0, %v999_v37  ;;  %v870_v47 = vand.u32 3, %v869_v32 }
 0x268   :  { %v665_v23 = vxor.u32 2147483648, %v1109_v45  ;;  %v848_v25 = vsub.s32 32, %v847_v44  ;;  %v852_v48 = vsub.s32 4294967266, %v847_v44  ;;  %v849_v55 = vshll.u32 %v840_v14, %v847_v44 }
 0x269   :  { %v669_v43 = vsel %vm667_vm6, %v668_v26, %v1109_v45  ;;  %vm875_vm2 = vcmp.eq.s32.totalorder %v870_v47, 2  ;;  %vm872_vm3 = vcmp.eq.s32.totalorder %v870_v47, 0  ;;  %vm871_vm4 = vcmp.lt.s32.totalorder %v870_v47, 2 }
 0x26a   :  { %v666_v31 = vsel %vm664_vm7, %v1107_v21, %v665_v23  ;;  %v850_v56 = vshrl.u32 %v832_v38, %v848_v25  ;;  %v853_v57 = vadd.s32 127, %v852_v48 }
 0x26b   :  { %v670_v29 = vsel %vm663_vm9, %v666_v31, %v669_v43 }
 0x26c   :  { %v671_v53 = vsel %vm660_vm10, nan, %v670_v29  ;;  %v851_v59 = vor.u32 %v850_v56, %v849_v55  ;;  %v854_v46 = vshll.u32 %v853_v57, 23 }
 0x26e   :  { %v855_v0 = vor.u32 4788187, %v854_v46  ;;  %v858_v13 = vcvt.s32.f32 %v851_v59 }
 0x26f   :  { %v1111_v62 = vpop.eup %1110 }
 0x270   :  { %v1113_v63 = vpop.eup %1112  ;;  %v772_v1 = vxor.u32 2147483648, %v1111_v62  ;;  %v856_v34 = vand.u32 2147483647, %v855_v0 }
 0x271   :  { %v769_v41 = vxor.u32 2147483648, %v1113_v63 }
 0x272   :  { %v773_v15 = vsel %vm771_vm11, %v772_v1, %v1113_v63  ;;  %v859_v49 = vmul.f32 %v858_v13, %v856_v34 }
 0x273   :  { %v770_v39 = vsel %vm768_vm1, %v1111_v62, %v769_v41 }
 0x274   :  { %v774_v4 = vsel %vm767_vm13, %v770_v39, %v773_v15  ;;  %v860_v28 = vxor.u32 2147483648, %v859_v49 }
 0x275   :  { %v775_v27 = vsel %vm764_vm14, nan, %v774_v4 }
 0x276   :  { %v1055_v11 = vpack.c.bf16 %v775_v27, %v671_v53  ;;  %v861_v18 = vsel %vm778_vm15, %v860_v28, %v859_v49 }
 0x277   :  { %v864_v9 = vsel %vm777_vm0, %v1436_v51, %v861_v18 }
 0x278   :  { %1056 = vmatpush3.bf16.msra.mxu0 %v1055_v11  ;;  %1114 = vcosq.f32 %v864_v9 }
 0x279   :  { %1046 = vmatprep.subr.mxu0 %v1142_v2  ;;  %1116 = vsinq.f32 %v864_v9  ;;  %v880_v2 = vld [vmem:[%s1604_s6] sm:$0x1] }
 0x282   :  { %v1115_v8 = vpop.eup %1114 }
 0x283   :  { %v1117_v7 = vpop.eup %1116  ;;  %v876_v52 = vxor.u32 2147483648, %v1115_v8 }
 0x284   :  { %v873_v10 = vxor.u32 2147483648, %v1117_v7 }
 0x285   :  { %v877_v40 = vsel %vm875_vm2, %v876_v52, %v1117_v7 }
 0x286   :  { %v874_v61 = vsel %vm872_vm3, %v1115_v8, %v873_v10 }
 0x287   :  { %v878_v50 = vsel %vm871_vm4, %v874_v61, %v877_v40 }
 0x288   :  { %v879_v12 = vsel %vm868_vm5, nan, %v878_v50 }
 0x289   :  { %1047 = vmatpush3.msra.mxu0 %v879_v12 }
 0x28a   :  { %1049 = vmatmul.mubr.msk.f32.vlgmr.msra.gmra.mrb[6].mxu0 %vm478_vm12, %v880_v2 }
 0x35d   :  { %v951_v14 = vpop.f32.mrb[6].mxu0 }
 0x35e   :  { %v952_v3 = vadd.f32 %v951_v14, %v881_v36  ;;  %v1050_v22 = vpop.f32.mrb[7].mxu0 }
 0x360   :  { %955 = vst [vmem:[#allocation3] sm:$0x1] %v952_v3 }
 0x361   :  { %1129 = shalt.err (!%p1126_p4)
}
 0x362   :  { %s1130_s30 = scalar_lea.hbm %s1605_s7, 16 }
 0x363   :  { %p1131_p5 = scmp.ne.s32.totalorder %s1605_s7, %s1130_s30  ;;  %p1134_p6 = scmp.lt.u32.totalorder %s1130_s30, %s1605_s7 }
 0x365   :  { %p1136_p7 = pnand %p1134_p6, %p1131_p5 }
 0x367   :  { %1139 = shalt.err (!%p1136_p7)
}
 0x368   :  { %965 = dma.vmem_to_hbm [thread:$0]  %s963_s27, 16, %s1605_s7, [#allocation4]  }
 0x369   :  { %1140 = dma.done.wait [#allocation4], 16  }
 0x36a   :  { %1141 = vsyncadd [#allocation4], 4294967280 }
 0x36b   :  { %969 = vsyncpa [#allocation4], 1 }

</bundles_post_ra>
